<compile_context>
chip_gen: v7x
topology: tpu7x:2x2x1
jax: 0.10.0
libtpu: 0.0.40
codegen_flags: <defaults>
</compile_context>

<pallas_src>
import jax
import jax.numpy as jnp
from jax.experimental import pallas as pl
from jax.experimental.pallas import tpu as pltpu

_HIGH = jax.lax.Precision.HIGHEST


def _pack_slab(items):
    """Pack small 2-D f32 constants into one slab; each segment starts at a
    row offset that is a multiple of 8 (sublane aligned). Returns (slab, offsets)."""
    width = max(a.shape[1] for _, a in items)
    offs, segs, rows = {}, [], 0
    for name, a in items:
        r = (-(-a.shape[0] // 8)) * 8
        seg = jnp.zeros((r, width), jnp.float32).at[: a.shape[0], : a.shape[1]].set(a)
        offs[name] = rows
        segs.append(seg)
        rows += r
    return jnp.concatenate(segs, axis=0), offs


def attention_threshold_coupler(gpcm_betas, coral_taus, theta, params, *,
                                tn=32768, vmem_limit_bytes=None):
    """gpcm_betas: (B, S, T); coral_taus: (T,); theta: (B, S)."""
    B, S, T = gpcm_betas.shape
    assert theta.shape == (B, S)
    N = B * S
    N2 = pl.cdiv(N, 2)          # tokens per half (lane columns of the packed layout)
    T2, T6 = 2 * T, 6 * T

    p = {k: jnp.asarray(v, jnp.float32) for k, v in params.items()}
    # The seq-len-1 reduction assumes these are the V-slice of the packed in_proj.
    assert p["wv_g"].shape == (T, T) and p["wv_c"].shape == (T, T), (
        "wv_g / wv_c must be the (T, T) V-slice of MultiheadAttention in_proj")

    ct = jnp.asarray(coral_taus, jnp.float32).reshape(T)

    # Grid-invariant gpcm->coral attention output (softmax over one key == 1).
    ga = jnp.dot(p["wo_g"], jnp.dot(p["wv_g"], ct, precision=_HIGH) + p["bv_g"],
                 precision=_HIGH) + p["bo_g"]
    # coral->gpcm attention folded: out_proj(V(x)) == wvo @ x + cbias (coral res. added).
    wvo = jnp.dot(p["wo_c"], p["wv_c"], precision=_HIGH)
    cbias = jnp.dot(p["wo_c"], p["bv_c"], precision=_HIGH) + p["bo_c"] + ct

    # ---- pack all tiny constants into two slabs (2 DMAs instead of ~21) ----
    mats, m_off = _pack_slab([
        ("wvo", wvo),
        ("w1a", p["w1a"]), ("w1b", p["w1b"]),
        ("w2a", p["w2a"]), ("w2b", p["w2b"]),
        ("wig", p["wi"][:, :T]), ("wic", p["wi"][:, T:]),
    ])
    col = lambda v: v.reshape(-1, 1)
    vecs, v_off = _pack_slab([
        ("ga", col(ga)), ("cbias", col(cbias)),
        ("ln1w", col(p["ln1_w"])), ("ln1b", col(p["ln1_b"])),
        ("ln2w", col(p["ln2_w"])), ("ln2b", col(p["ln2_b"])),
        ("b1a", col(p["b1a"])), ("b1b", col(p["b1b"])),
        ("b2a", col(p["b2a"])), ("b2b", col(p["b2b"])),
        ("bi", col(p["bi"])),
    ])

    # ---- lane-dense, 8-sublane-dense input: two token halves on sublanes ----
    xf = jnp.asarray(gpcm_betas, jnp.float32).reshape(N, T)
    if 2 * N2 > N:                                   # odd N: pad a single token row
        xf = jnp.pad(xf, ((0, 2 * N2 - N), (0, 0)))
    xp = xf.reshape(2, N2, T).transpose(0, 2, 1).reshape(T2, N2)   # (2T, N2)

    # Token tile: big (default 32K lanes, ~8.5 MiB double-buffered VMEM) to
    # amortize the ~0.35us per-step overhead; aim for >=2 grid steps (v7x 2 TCs).
    tn_eff = min(int(tn), max(128, pl.cdiv(pl.cdiv(N2, 2), 128) * 128))
    if tn_eff >= N2:
        tn_eff = N2                                  # single full-extent block
    grid = (pl.cdiv(N2, tn_eff),)                    # ragged last block handled by Pallas

    def kernel(x_ref, mats_ref, vecs_ref, out_ref):
        def W(name, r, c):
            o = m_off[name]
            return mats_ref[o:o + r, :c]

        def V(name, r):
            o = v_off[name]
            return vecs_ref[o:o + r, :]

        wvo_ = W("wvo", T, T)
        w1a, w1b = W("w1a", T2, T), W("w1b", T, T2)
        w2a, w2b = W("w2a", T2, T), W("w2b", T, T2)
        wig, wic = W("wig", T, T), W("wic", T, T)
        ga_, cb = V("ga", T), V("cbias", T)
        l1w, l1b = V("ln1w", T), V("ln1b", T)
        l2w, l2b = V("ln2w", T), V("ln2b", T)
        b1a, b1b = V("b1a", T2), V("b1b", T)
        b2a, b2b = V("b2a", T2), V("b2b", T)
        bi = V("bi", T)

        def ln(y, w, b, eps=1e-5):                   # LayerNorm over sublane (threshold) axis
            mu = jnp.mean(y, axis=0, keepdims=True)
            var = jnp.mean((y - mu) ** 2, axis=0, keepdims=True)
            return (y - mu) * jax.lax.rsqrt(var + eps) * w + b

        def dot(a, b):
            return jnp.dot(a, b, preferred_element_type=jnp.float32)

        def process_half(x):                         # x: (T, tn) tokens-on-lanes
            # gpcm branch (gpcm->coral attention output `ga_` hoisted to wrapper)
            g1 = ln(x + ga_, l1w, l1b)
            h1 = jnp.maximum(dot(w1a, g1) + b1a, 0.0)
            g2 = g1 + dot(w1b, h1) + b1b
            # coral branch: folded coral->gpcm attention + residual inside `cb`
            c1 = ln(dot(wvo_, x) + cb, l2w, l2b)
            h2 = jnp.maximum(dot(w2a, c1) + b2a, 0.0)
            c2 = c1 + dot(w2b, h2) + b2b
            # integration(cat([g2, c2])) == wig @ g2 + wic @ c2 + bi
            u = jnp.tanh(dot(wig, g2) + dot(wic, c2) + bi)
            return u, g2, c2

        u0, g20, c20 = process_half(x_ref[0:T, :])
        u1, g21, c21 = process_half(x_ref[T:T2, :])

        # fused output slab: rows = [uni h0, uni h1, g2 h0, g2 h1, c2 h0, c2 h1]
        out_ref[0 * T:1 * T, :] = u0
        out_ref[1 * T:2 * T, :] = u1
        out_ref[2 * T:3 * T, :] = g20
        out_ref[3 * T:4 * T, :] = g21
        out_ref[4 * T:5 * T, :] = c20
        out_ref[5 * T:6 * T, :] = c21

    const_spec = lambda a: pl.BlockSpec(a.shape, lambda i: (0, 0))
    # Memory-bound kernel: dense traffic is exactly (2T + 6T) * N2 * 4 = 16*T*N bytes.
    cost = pl.CostEstimate(
        flops=int(22 * N * T * T + 64 * N * T),
        transcendentals=int(N * (T + 2)),
        bytes_accessed=int(16 * N * T),
    )

    out = pl.pallas_call(
        kernel,
        out_shape=jax.ShapeDtypeStruct((T6, N2), jnp.float32),
        grid_spec=pltpu.PrefetchScalarGridSpec(
            num_scalar_prefetch=0,
            grid=grid,
            in_specs=[pl.BlockSpec((T2, tn_eff), lambda i: (0, i)),
                      const_spec(mats), const_spec(vecs)],
            out_specs=pl.BlockSpec((T6, tn_eff), lambda i: (0, i)),
        ),
        compiler_params=pltpu.CompilerParams(
            dimension_semantics=("parallel",),
            vmem_limit_bytes=vmem_limit_bytes),
        cost_estimate=cost,
    )(xp, mats, vecs)

    # Single relayout for the fused slab, then slice the three results apart.
    o = out.reshape(3, 2, T, N2).transpose(0, 1, 3, 2).reshape(3, 2 * N2, T)[:, :N]
    unified = o[0].reshape(B, S, T)
    coupling_info = {
        "gpcm_attended": o[1].reshape(B, S, T),
        "coral_attended": o[2].reshape(B, S, T),
        # seq-len-1 attention -> averaged attention weights are exactly 1.
        "gpcm_attention_weights": jnp.ones((N, 1, 1), jnp.float32),
        "coral_attention_weights": jnp.ones((N, 1, 1), jnp.float32),
    }
    return unified, coupling_info
    # TODO(synk): dropout (p=0.1) is implemented in eval mode (identity).


# ------------------------- pure-JAX reference (checks) -------------------------
def _reference(gpcm_betas, coral_taus, theta, params):
    B, S, T = gpcm_betas.shape
    p = params
    coral_exp = jnp.broadcast_to(coral_taus[None, None, :], (B, S, T))

    def mha_out(value, wv, bv, wo, bo):
        v = value @ wv.T + bv          # softmax over single key == 1
        return v @ wo.T + bo

    def ln(x, w, b, eps=1e-5):
        mu = x.mean(-1, keepdims=True)
        var = ((x - mu) ** 2).mean(-1, keepdims=True)
        return (x - mu) / jnp.sqrt(var + eps) * w + b

    ga = mha_out(coral_exp, p["wv_g"], p["bv_g"], p["wo_g"], p["bo_g"])
    g1 = ln(ga + gpcm_betas, p["ln1_w"], p["ln1_b"])
    g2 = g1 + (jnp.maximum(g1 @ p["w1a"].T + p["b1a"], 0) @ p["w1b"].T + p["b1b"])

    ca = mha_out(gpcm_betas, p["wv_c"], p["bv_c"], p["wo_c"], p["bo_c"])
    c1 = ln(ca + coral_exp, p["ln2_w"], p["ln2_b"])
    c2 = c1 + (jnp.maximum(c1 @ p["w2a"].T + p["b2a"], 0) @ p["w2b"].T + p["b2b"])

    cat = jnp.concatenate([g2, c2], axis=-1)
    return jnp.tanh(cat @ p["wi"].T + p["bi"]), g2, c2


def _init_params(key, T):
    ks = jax.random.split(key, 12)
    n = lambda k, s: (jax.random.normal(k, s, jnp.float32) * 0.1)
    return {
        "wv_g": n(ks[0], (T, T)), "bv_g": n(ks[1], (T,)),
        "wo_g": n(ks[2], (T, T)), "bo_g": jnp.zeros((T,), jnp.float32),
        "wv_c": n(ks[3], (T, T)), "bv_c": n(ks[4], (T,)),
        "wo_c": n(ks[5], (T, T)), "bo_c": jnp.zeros((T,), jnp.float32),
        "ln1_w": jnp.ones((T,), jnp.float32), "ln1_b": jnp.zeros((T,), jnp.float32),
        "ln2_w": jnp.ones((T,), jnp.float32), "ln2_b": jnp.zeros((T,), jnp.float32),
        "w1a": n(ks[6], (2 * T, T)), "b1a": jnp.zeros((2 * T,), jnp.float32),
        "w1b": n(ks[7], (T, 2 * T)), "b1b": jnp.zeros((T,), jnp.float32),
        "w2a": n(ks[8], (2 * T, T)), "b2a": jnp.zeros((2 * T,), jnp.float32),
        "w2b": n(ks[9], (T, 2 * T)), "b2b": jnp.zeros((T,), jnp.float32),
        "wi": n(ks[10], (T, 2 * T)), "bi": n(ks[11], (T,)),
    }


if __name__ == "__main__":
    T = 4  # n_thresholds=4 (n_heads=2, head_dim=2)
    key = jax.random.PRNGKey(0)
    kp, kd = jax.random.split(key)
    params = _init_params(kp, T)

    # (2, 8): tiny single-block case.  (3, 87): odd token count + 2-step grid
    # with a ragged last lane block — exercises the padded/masked paths.
    for (B, S) in [(2, 8), (3, 87)]:
        k1, k2, k3 = jax.random.split(jax.random.fold_in(kd, B * 1000 + S), 3)
        gpcm_betas = jax.random.normal(k1, (B, S, T), jnp.float32)
        coral_taus = jax.random.normal(k2, (T,), jnp.float32)
        theta = jax.random.normal(k3, (B, S), jnp.float32)

        unified, info = attention_threshold_coupler(gpcm_betas, coral_taus, theta, params)
        jax.block_until_ready(unified)

        ref_u, ref_g, ref_c = _reference(gpcm_betas, coral_taus, theta, params)
        assert jnp.allclose(unified, ref_u, atol=1e-5), f"unified mismatch ({B},{S})"
        assert jnp.allclose(info["gpcm_attended"], ref_g, atol=1e-5), f"gpcm mismatch ({B},{S})"
        assert jnp.allclose(info["coral_attended"], ref_c, atol=1e-5), f"coral mismatch ({B},{S})"

    print("KERNEL_OK")
</pallas_src>

<mosaic_0001>
module attributes {stable_mosaic.version = 11 : i64} {
  func.func @kernel(%arg0: i32, %arg1: memref<8x8xf32, #tpu.memory_space<vmem>>, %arg2: memref<56x8xf32, #tpu.memory_space<vmem>>, %arg3: memref<88x1xf32, #tpu.memory_space<vmem>>, %arg4: memref<24x8xf32, #tpu.memory_space<vmem>>) attributes {dimension_semantics = [#tpu.dimension_semantics<parallel>], iteration_bounds = array<i64: 1>, scalar_prefetch = 0 : i64, scratch_operands = 0 : i64, tpu.core_type = #tpu.core_type<tc>, window_params = [{transform_indices = @transform_0, window_bounds = array<i64: 8, 8>}, {pipeline_mode = #tpu.pipeline_mode<synchronous>, transform_indices = @transform_1, window_bounds = array<i64: 56, 8>}, {pipeline_mode = #tpu.pipeline_mode<synchronous>, transform_indices = @transform_2, window_bounds = array<i64: 88, 1>}, {transform_indices = @transform_3, window_bounds = array<i64: 24, 8>}]} {
    %c0 = arith.constant 0 : index
    %c0_0 = arith.constant 0 : index
    %0 = vector.load %arg2[%c0, %c0_0] : memref<56x8xf32, #tpu.memory_space<vmem>>, vector<4x4xf32>
    %c8 = arith.constant 8 : index
    %c0_1 = arith.constant 0 : index
    %1 = vector.load %arg2[%c8, %c0_1] : memref<56x8xf32, #tpu.memory_space<vmem>>, vector<8x4xf32>
    %c16 = arith.constant 16 : index
    %c0_2 = arith.constant 0 : index
    %2 = vector.load %arg2[%c16, %c0_2] : memref<56x8xf32, #tpu.memory_space<vmem>>, vector<4x8xf32>
    %c24 = arith.constant 24 : index
    %c0_3 = arith.constant 0 : index
    %3 = vector.load %arg2[%c24, %c0_3] : memref<56x8xf32, #tpu.memory_space<vmem>>, vector<8x4xf32>
    %c32 = arith.constant 32 : index
    %c0_4 = arith.constant 0 : index
    %4 = vector.load %arg2[%c32, %c0_4] : memref<56x8xf32, #tpu.memory_space<vmem>>, vector<4x8xf32>
    %c40 = arith.constant 40 : index
    %c0_5 = arith.constant 0 : index
    %5 = vector.load %arg2[%c40, %c0_5] : memref<56x8xf32, #tpu.memory_space<vmem>>, vector<4x4xf32>
    %c48 = arith.constant 48 : index
    %c0_6 = arith.constant 0 : index
    %6 = vector.load %arg2[%c48, %c0_6] : memref<56x8xf32, #tpu.memory_space<vmem>>, vector<4x4xf32>
    %c0_7 = arith.constant 0 : index
    %c0_8 = arith.constant 0 : index
    %7 = vector.load %arg3[%c0_7, %c0_8] : memref<88x1xf32, #tpu.memory_space<vmem>>, vector<4x1xf32>
    %c8_9 = arith.constant 8 : index
    %c0_10 = arith.constant 0 : index
    %8 = vector.load %arg3[%c8_9, %c0_10] : memref<88x1xf32, #tpu.memory_space<vmem>>, vector<4x1xf32>
    %c16_11 = arith.constant 16 : index
    %c0_12 = arith.constant 0 : index
    %9 = vector.load %arg3[%c16_11, %c0_12] : memref<88x1xf32, #tpu.memory_space<vmem>>, vector<4x1xf32>
    %c24_13 = arith.constant 24 : index
    %c0_14 = arith.constant 0 : index
    %10 = vector.load %arg3[%c24_13, %c0_14] : memref<88x1xf32, #tpu.memory_space<vmem>>, vector<4x1xf32>
    %c32_15 = arith.constant 32 : index
    %c0_16 = arith.constant 0 : index
    %11 = vector.load %arg3[%c32_15, %c0_16] : memref<88x1xf32, #tpu.memory_space<vmem>>, vector<4x1xf32>
    %c40_17 = arith.constant 40 : index
    %c0_18 = arith.constant 0 : index
    %12 = vector.load %arg3[%c40_17, %c0_18] : memref<88x1xf32, #tpu.memory_space<vmem>>, vector<4x1xf32>
    %c48_19 = arith.constant 48 : index
    %c0_20 = arith.constant 0 : index
    %13 = vector.load %arg3[%c48_19, %c0_20] : memref<88x1xf32, #tpu.memory_space<vmem>>, vector<8x1xf32>
    %c56 = arith.constant 56 : index
    %c0_21 = arith.constant 0 : index
    %14 = vector.load %arg3[%c56, %c0_21] : memref<88x1xf32, #tpu.memory_space<vmem>>, vector<4x1xf32>
    %c64 = arith.constant 64 : index
    %c0_22 = arith.constant 0 : index
    %15 = vector.load %arg3[%c64, %c0_22] : memref<88x1xf32, #tpu.memory_space<vmem>>, vector<8x1xf32>
    %c72 = arith.constant 72 : index
    %c0_23 = arith.constant 0 : index
    %16 = vector.load %arg3[%c72, %c0_23] : memref<88x1xf32, #tpu.memory_space<vmem>>, vector<4x1xf32>
    %c80 = arith.constant 80 : index
    %c0_24 = arith.constant 0 : index
    %17 = vector.load %arg3[%c80, %c0_24] : memref<88x1xf32, #tpu.memory_space<vmem>>, vector<4x1xf32>
    %c0_25 = arith.constant 0 : index
    %c0_26 = arith.constant 0 : index
    %18 = vector.load %arg1[%c0_25, %c0_26] : memref<8x8xf32, #tpu.memory_space<vmem>>, vector<4x8xf32>
    %19 = vector.broadcast %7 : vector<4x1xf32> to vector<4x8xf32>
    %20 = arith.addf %18, %19 : vector<4x8xf32>
    %cst = arith.constant dense<0.000000e+00> : vector<8xf32>
    %21 = vector.multi_reduction <add>, %20, %cst [0] : vector<4x8xf32> to vector<8xf32>
    %22 = vector.shape_cast %21 : vector<8xf32> to vector<1x8xf32>
    %cst_27 = arith.constant 4.000000e+00 : f32
    %23 = vector.broadcast %cst_27 : f32 to vector<1x8xf32>
    %24 = arith.divf %22, %23 : vector<1x8xf32>
    %25 = vector.broadcast %24 : vector<1x8xf32> to vector<4x8xf32>
    %26 = arith.subf %20, %25 : vector<4x8xf32>
    %27 = arith.mulf %26, %26 : vector<4x8xf32>
    %cst_28 = arith.constant dense<0.000000e+00> : vector<8xf32>
    %28 = vector.multi_reduction <add>, %27, %cst_28 [0] : vector<4x8xf32> to vector<8xf32>
    %29 = vector.shape_cast %28 : vector<8xf32> to vector<1x8xf32>
    %cst_29 = arith.constant 4.000000e+00 : f32
    %30 = vector.broadcast %cst_29 : f32 to vector<1x8xf32>
    %31 = arith.divf %29, %30 : vector<1x8xf32>
    %32 = vector.broadcast %24 : vector<1x8xf32> to vector<4x8xf32>
    %33 = arith.subf %20, %32 : vector<4x8xf32>
    %cst_30 = arith.constant 9.99999974E-6 : f32
    %34 = vector.broadcast %cst_30 : f32 to vector<1x8xf32>
    %35 = arith.addf %31, %34 : vector<1x8xf32>
    %36 = math.rsqrt %35 : vector<1x8xf32>
    %37 = vector.broadcast %36 : vector<1x8xf32> to vector<4x8xf32>
    %38 = arith.mulf %33, %37 : vector<4x8xf32>
    %39 = vector.broadcast %9 : vector<4x1xf32> to vector<4x8xf32>
    %40 = arith.mulf %38, %39 : vector<4x8xf32>
    %41 = vector.broadcast %10 : vector<4x1xf32> to vector<4x8xf32>
    %42 = arith.addf %40, %41 : vector<4x8xf32>
    %cst_31 = arith.constant dense<0.000000e+00> : vector<8x8xf32>
    %43 = tpu.matmul %1, %42, %cst_31 {dimension_numbers = #tpu.dot_dimension_numbers<[1], [0], [0], [1], [0, 0, 1, 1], [], []>} : vector<8x4xf32>, vector<4x8xf32>, vector<8x8xf32> -> vector<8x8xf32>
    %44 = vector.broadcast %13 : vector<8x1xf32> to vector<8x8xf32>
    %45 = arith.addf %43, %44 : vector<8x8xf32>
    %cst_32 = arith.constant 0.000000e+00 : f32
    %46 = vector.broadcast %cst_32 : f32 to vector<8x8xf32>
    %47 = arith.maximumf %45, %46 : vector<8x8xf32>
    %cst_33 = arith.constant dense<0.000000e+00> : vector<4x8xf32>
    %48 = tpu.matmul %2, %47, %cst_33 {dimension_numbers = #tpu.dot_dimension_numbers<[1], [0], [0], [1], [0, 0, 1, 1], [], []>} : vector<4x8xf32>, vector<8x8xf32>, vector<4x8xf32> -> vector<4x8xf32>
    %49 = arith.addf %42, %48 : vector<4x8xf32>
    %50 = vector.broadcast %14 : vector<4x1xf32> to vector<4x8xf32>
    %51 = arith.addf %49, %50 : vector<4x8xf32>
    %cst_34 = arith.constant dense<0.000000e+00> : vector<4x8xf32>
    %52 = tpu.matmul %0, %18, %cst_34 {dimension_numbers = #tpu.dot_dimension_numbers<[1], [0], [0], [1], [0, 0, 1, 1], [], []>} : vector<4x4xf32>, vector<4x8xf32>, vector<4x8xf32> -> vector<4x8xf32>
    %53 = vector.broadcast %8 : vector<4x1xf32> to vector<4x8xf32>
    %54 = arith.addf %52, %53 : vector<4x8xf32>
    %cst_35 = arith.constant dense<0.000000e+00> : vector<8xf32>
    %55 = vector.multi_reduction <add>, %54, %cst_35 [0] : vector<4x8xf32> to vector<8xf32>
    %56 = vector.shape_cast %55 : vector<8xf32> to vector<1x8xf32>
    %cst_36 = arith.constant 4.000000e+00 : f32
    %57 = vector.broadcast %cst_36 : f32 to vector<1x8xf32>
    %58 = arith.divf %56, %57 : vector<1x8xf32>
    %59 = vector.broadcast %58 : vector<1x8xf32> to vector<4x8xf32>
    %60 = arith.subf %54, %59 : vector<4x8xf32>
    %61 = arith.mulf %60, %60 : vector<4x8xf32>
    %cst_37 = arith.constant dense<0.000000e+00> : vector<8xf32>
    %62 = vector.multi_reduction <add>, %61, %cst_37 [0] : vector<4x8xf32> to vector<8xf32>
    %63 = vector.shape_cast %62 : vector<8xf32> to vector<1x8xf32>
    %cst_38 = arith.constant 4.000000e+00 : f32
    %64 = vector.broadcast %cst_38 : f32 to vector<1x8xf32>
    %65 = arith.divf %63, %64 : vector<1x8xf32>
    %66 = vector.broadcast %58 : vector<1x8xf32> to vector<4x8xf32>
    %67 = arith.subf %54, %66 : vector<4x8xf32>
    %cst_39 = arith.constant 9.99999974E-6 : f32
    %68 = vector.broadcast %cst_39 : f32 to vector<1x8xf32>
    %69 = arith.addf %65, %68 : vector<1x8xf32>
    %70 = math.rsqrt %69 : vector<1x8xf32>
    %71 = vector.broadcast %70 : vector<1x8xf32> to vector<4x8xf32>
    %72 = arith.mulf %67, %71 : vector<4x8xf32>
    %73 = vector.broadcast %11 : vector<4x1xf32> to vector<4x8xf32>
    %74 = arith.mulf %72, %73 : vector<4x8xf32>
    %75 = vector.broadcast %12 : vector<4x1xf32> to vector<4x8xf32>
    %76 = arith.addf %74, %75 : vector<4x8xf32>
    %cst_40 = arith.constant dense<0.000000e+00> : vector<8x8xf32>
    %77 = tpu.matmul %3, %76, %cst_40 {dimension_numbers = #tpu.dot_dimension_numbers<[1], [0], [0], [1], [0, 0, 1, 1], [], []>} : vector<8x4xf32>, vector<4x8xf32>, vector<8x8xf32> -> vector<8x8xf32>
    %78 = vector.broadcast %15 : vector<8x1xf32> to vector<8x8xf32>
    %79 = arith.addf %77, %78 : vector<8x8xf32>
    %cst_41 = arith.constant 0.000000e+00 : f32
    %80 = vector.broadcast %cst_41 : f32 to vector<8x8xf32>
    %81 = arith.maximumf %79, %80 : vector<8x8xf32>
    %cst_42 = arith.constant dense<0.000000e+00> : vector<4x8xf32>
    %82 = tpu.matmul %4, %81, %cst_42 {dimension_numbers = #tpu.dot_dimension_numbers<[1], [0], [0], [1], [0, 0, 1, 1], [], []>} : vector<4x8xf32>, vector<8x8xf32>, vector<4x8xf32> -> vector<4x8xf32>
    %83 = arith.addf %76, %82 : vector<4x8xf32>
    %84 = vector.broadcast %16 : vector<4x1xf32> to vector<4x8xf32>
    %85 = arith.addf %83, %84 : vector<4x8xf32>
    %cst_43 = arith.constant dense<0.000000e+00> : vector<4x8xf32>
    %86 = tpu.matmul %5, %51, %cst_43 {dimension_numbers = #tpu.dot_dimension_numbers<[1], [0], [0], [1], [0, 0, 1, 1], [], []>} : vector<4x4xf32>, vector<4x8xf32>, vector<4x8xf32> -> vector<4x8xf32>
    %cst_44 = arith.constant dense<0.000000e+00> : vector<4x8xf32>
    %87 = tpu.matmul %6, %85, %cst_44 {dimension_numbers = #tpu.dot_dimension_numbers<[1], [0], [0], [1], [0, 0, 1, 1], [], []>} : vector<4x4xf32>, vector<4x8xf32>, vector<4x8xf32> -> vector<4x8xf32>
    %88 = arith.addf %86, %87 : vector<4x8xf32>
    %89 = vector.broadcast %17 : vector<4x1xf32> to vector<4x8xf32>
    %90 = arith.addf %88, %89 : vector<4x8xf32>
    %91 = math.tanh %90 : vector<4x8xf32>
    %c4 = arith.constant 4 : index
    %c0_45 = arith.constant 0 : index
    %92 = vector.load %arg1[%c4, %c0_45] : memref<8x8xf32, #tpu.memory_space<vmem>>, vector<4x8xf32>
    %93 = vector.broadcast %7 : vector<4x1xf32> to vector<4x8xf32>
    %94 = arith.addf %92, %93 : vector<4x8xf32>
    %cst_46 = arith.constant dense<0.000000e+00> : vector<8xf32>
    %95 = vector.multi_reduction <add>, %94, %cst_46 [0] : vector<4x8xf32> to vector<8xf32>
    %96 = vector.shape_cast %95 : vector<8xf32> to vector<1x8xf32>
    %cst_47 = arith.constant 4.000000e+00 : f32
    %97 = vector.broadcast %cst_47 : f32 to vector<1x8xf32>
    %98 = arith.divf %96, %97 : vector<1x8xf32>
    %99 = vector.broadcast %98 : vector<1x8xf32> to vector<4x8xf32>
    %100 = arith.subf %94, %99 : vector<4x8xf32>
    %101 = arith.mulf %100, %100 : vector<4x8xf32>
    %cst_48 = arith.constant dense<0.000000e+00> : vector<8xf32>
    %102 = vector.multi_reduction <add>, %101, %cst_48 [0] : vector<4x8xf32> to vector<8xf32>
    %103 = vector.shape_cast %102 : vector<8xf32> to vector<1x8xf32>
    %cst_49 = arith.constant 4.000000e+00 : f32
    %104 = vector.broadcast %cst_49 : f32 to vector<1x8xf32>
    %105 = arith.divf %103, %104 : vector<1x8xf32>
    %106 = vector.broadcast %98 : vector<1x8xf32> to vector<4x8xf32>
    %107 = arith.subf %94, %106 : vector<4x8xf32>
    %cst_50 = arith.constant 9.99999974E-6 : f32
    %108 = vector.broadcast %cst_50 : f32 to vector<1x8xf32>
    %109 = arith.addf %105, %108 : vector<1x8xf32>
    %110 = math.rsqrt %109 : vector<1x8xf32>
    %111 = vector.broadcast %110 : vector<1x8xf32> to vector<4x8xf32>
    %112 = arith.mulf %107, %111 : vector<4x8xf32>
    %113 = vector.broadcast %9 : vector<4x1xf32> to vector<4x8xf32>
    %114 = arith.mulf %112, %113 : vector<4x8xf32>
    %115 = vector.broadcast %10 : vector<4x1xf32> to vector<4x8xf32>
    %116 = arith.addf %114, %115 : vector<4x8xf32>
    %cst_51 = arith.constant dense<0.000000e+00> : vector<8x8xf32>
    %117 = tpu.matmul %1, %116, %cst_51 {dimension_numbers = #tpu.dot_dimension_numbers<[1], [0], [0], [1], [0, 0, 1, 1], [], []>} : vector<8x4xf32>, vector<4x8xf32>, vector<8x8xf32> -> vector<8x8xf32>
    %118 = vector.broadcast %13 : vector<8x1xf32> to vector<8x8xf32>
    %119 = arith.addf %117, %118 : vector<8x8xf32>
    %cst_52 = arith.constant 0.000000e+00 : f32
    %120 = vector.broadcast %cst_52 : f32 to vector<8x8xf32>
    %121 = arith.maximumf %119, %120 : vector<8x8xf32>
    %cst_53 = arith.constant dense<0.000000e+00> : vector<4x8xf32>
    %122 = tpu.matmul %2, %121, %cst_53 {dimension_numbers = #tpu.dot_dimension_numbers<[1], [0], [0], [1], [0, 0, 1, 1], [], []>} : vector<4x8xf32>, vector<8x8xf32>, vector<4x8xf32> -> vector<4x8xf32>
    %123 = arith.addf %116, %122 : vector<4x8xf32>
    %124 = vector.broadcast %14 : vector<4x1xf32> to vector<4x8xf32>
    %125 = arith.addf %123, %124 : vector<4x8xf32>
    %cst_54 = arith.constant dense<0.000000e+00> : vector<4x8xf32>
    %126 = tpu.matmul %0, %92, %cst_54 {dimension_numbers = #tpu.dot_dimension_numbers<[1], [0], [0], [1], [0, 0, 1, 1], [], []>} : vector<4x4xf32>, vector<4x8xf32>, vector<4x8xf32> -> vector<4x8xf32>
    %127 = vector.broadcast %8 : vector<4x1xf32> to vector<4x8xf32>
    %128 = arith.addf %126, %127 : vector<4x8xf32>
    %cst_55 = arith.constant dense<0.000000e+00> : vector<8xf32>
    %129 = vector.multi_reduction <add>, %128, %cst_55 [0] : vector<4x8xf32> to vector<8xf32>
    %130 = vector.shape_cast %129 : vector<8xf32> to vector<1x8xf32>
    %cst_56 = arith.constant 4.000000e+00 : f32
    %131 = vector.broadcast %cst_56 : f32 to vector<1x8xf32>
    %132 = arith.divf %130, %131 : vector<1x8xf32>
    %133 = vector.broadcast %132 : vector<1x8xf32> to vector<4x8xf32>
    %134 = arith.subf %128, %133 : vector<4x8xf32>
    %135 = arith.mulf %134, %134 : vector<4x8xf32>
    %cst_57 = arith.constant dense<0.000000e+00> : vector<8xf32>
    %136 = vector.multi_reduction <add>, %135, %cst_57 [0] : vector<4x8xf32> to vector<8xf32>
    %137 = vector.shape_cast %136 : vector<8xf32> to vector<1x8xf32>
    %cst_58 = arith.constant 4.000000e+00 : f32
    %138 = vector.broadcast %cst_58 : f32 to vector<1x8xf32>
    %139 = arith.divf %137, %138 : vector<1x8xf32>
    %140 = vector.broadcast %132 : vector<1x8xf32> to vector<4x8xf32>
    %141 = arith.subf %128, %140 : vector<4x8xf32>
    %cst_59 = arith.constant 9.99999974E-6 : f32
    %142 = vector.broadcast %cst_59 : f32 to vector<1x8xf32>
    %143 = arith.addf %139, %142 : vector<1x8xf32>
    %144 = math.rsqrt %143 : vector<1x8xf32>
    %145 = vector.broadcast %144 : vector<1x8xf32> to vector<4x8xf32>
    %146 = arith.mulf %141, %145 : vector<4x8xf32>
    %147 = vector.broadcast %11 : vector<4x1xf32> to vector<4x8xf32>
    %148 = arith.mulf %146, %147 : vector<4x8xf32>
    %149 = vector.broadcast %12 : vector<4x1xf32> to vector<4x8xf32>
    %150 = arith.addf %148, %149 : vector<4x8xf32>
    %cst_60 = arith.constant dense<0.000000e+00> : vector<8x8xf32>
    %151 = tpu.matmul %3, %150, %cst_60 {dimension_numbers = #tpu.dot_dimension_numbers<[1], [0], [0], [1], [0, 0, 1, 1], [], []>} : vector<8x4xf32>, vector<4x8xf32>, vector<8x8xf32> -> vector<8x8xf32>
    %152 = vector.broadcast %15 : vector<8x1xf32> to vector<8x8xf32>
    %153 = arith.addf %151, %152 : vector<8x8xf32>
    %cst_61 = arith.constant 0.000000e+00 : f32
    %154 = vector.broadcast %cst_61 : f32 to vector<8x8xf32>
    %155 = arith.maximumf %153, %154 : vector<8x8xf32>
    %cst_62 = arith.constant dense<0.000000e+00> : vector<4x8xf32>
    %156 = tpu.matmul %4, %155, %cst_62 {dimension_numbers = #tpu.dot_dimension_numbers<[1], [0], [0], [1], [0, 0, 1, 1], [], []>} : vector<4x8xf32>, vector<8x8xf32>, vector<4x8xf32> -> vector<4x8xf32>
    %157 = arith.addf %150, %156 : vector<4x8xf32>
    %158 = vector.broadcast %16 : vector<4x1xf32> to vector<4x8xf32>
    %159 = arith.addf %157, %158 : vector<4x8xf32>
    %cst_63 = arith.constant dense<0.000000e+00> : vector<4x8xf32>
    %160 = tpu.matmul %5, %125, %cst_63 {dimension_numbers = #tpu.dot_dimension_numbers<[1], [0], [0], [1], [0, 0, 1, 1], [], []>} : vector<4x4xf32>, vector<4x8xf32>, vector<4x8xf32> -> vector<4x8xf32>
    %cst_64 = arith.constant dense<0.000000e+00> : vector<4x8xf32>
    %161 = tpu.matmul %6, %159, %cst_64 {dimension_numbers = #tpu.dot_dimension_numbers<[1], [0], [0], [1], [0, 0, 1, 1], [], []>} : vector<4x4xf32>, vector<4x8xf32>, vector<4x8xf32> -> vector<4x8xf32>
    %162 = arith.addf %160, %161 : vector<4x8xf32>
    %163 = vector.broadcast %17 : vector<4x1xf32> to vector<4x8xf32>
    %164 = arith.addf %162, %163 : vector<4x8xf32>
    %165 = math.tanh %164 : vector<4x8xf32>
    %c0_65 = arith.constant 0 : index
    %c0_66 = arith.constant 0 : index
    %166 = vector.load %arg4[%c0_65, %c0_66] : memref<24x8xf32, #tpu.memory_space<vmem>>, vector<4x8xf32>
    tpu.vector_store %arg4[%c0_65, %c0_66], %91 {strides = array<i32>} : memref<24x8xf32, #tpu.memory_space<vmem>>, vector<4x8xf32>,
    %c4_67 = arith.constant 4 : index
    %c0_68 = arith.constant 0 : index
    %167 = vector.load %arg4[%c4_67, %c0_68] : memref<24x8xf32, #tpu.memory_space<vmem>>, vector<4x8xf32>
    tpu.vector_store %arg4[%c4_67, %c0_68], %165 {strides = array<i32>} : memref<24x8xf32, #tpu.memory_space<vmem>>, vector<4x8xf32>,
    %c8_69 = arith.constant 8 : index
    %c0_70 = arith.constant 0 : index
    %168 = vector.load %arg4[%c8_69, %c0_70] : memref<24x8xf32, #tpu.memory_space<vmem>>, vector<4x8xf32>
    tpu.vector_store %arg4[%c8_69, %c0_70], %51 {strides = array<i32>} : memref<24x8xf32, #tpu.memory_space<vmem>>, vector<4x8xf32>,
    %c12 = arith.constant 12 : index
    %c0_71 = arith.constant 0 : index
    %169 = vector.load %arg4[%c12, %c0_71] : memref<24x8xf32, #tpu.memory_space<vmem>>, vector<4x8xf32>
    tpu.vector_store %arg4[%c12, %c0_71], %125 {strides = array<i32>} : memref<24x8xf32, #tpu.memory_space<vmem>>, vector<4x8xf32>,
    %c16_72 = arith.constant 16 : index
    %c0_73 = arith.constant 0 : index
    %170 = vector.load %arg4[%c16_72, %c0_73] : memref<24x8xf32, #tpu.memory_space<vmem>>, vector<4x8xf32>
    tpu.vector_store %arg4[%c16_72, %c0_73], %85 {strides = array<i32>} : memref<24x8xf32, #tpu.memory_space<vmem>>, vector<4x8xf32>,
    %c20 = arith.constant 20 : index
    %c0_74 = arith.constant 0 : index
    %171 = vector.load %arg4[%c20, %c0_74] : memref<24x8xf32, #tpu.memory_space<vmem>>, vector<4x8xf32>
    tpu.vector_store %arg4[%c20, %c0_74], %159 {strides = array<i32>} : memref<24x8xf32, #tpu.memory_space<vmem>>, vector<4x8xf32>,
    return
  }
  func.func @transform_0(%arg0: i32) -> (i32, i32) {
    %c0_i32 = arith.constant 0 : i32
    %c0_i32_0 = arith.constant 0 : i32
    return %c0_i32, %arg0 : i32, i32
  }
  func.func @transform_1(%arg0: i32) -> (i32, i32) {
    %c0_i32 = arith.constant 0 : i32
    %c0_i32_0 = arith.constant 0 : i32
    %c0_i32_1 = arith.constant 0 : i32
    return %c0_i32, %c0_i32_0 : i32, i32
  }
  func.func @transform_2(%arg0: i32) -> (i32, i32) {
    %c0_i32 = arith.constant 0 : i32
    %c0_i32_0 = arith.constant 0 : i32
    %c0_i32_1 = arith.constant 0 : i32
    return %c0_i32, %c0_i32_0 : i32, i32
  }
  func.func @transform_3(%arg0: i32) -> (i32, i32) {
    %c0_i32 = arith.constant 0 : i32
    %c0_i32_0 = arith.constant 0 : i32
    return %c0_i32, %arg0 : i32, i32
  }
}

</mosaic_0001>

<bundles_post_ra>
// kernel: tpu_custom_call.1
= control target key start
LH: loop header
LB: loop body
LE: loop exit
PB: predicated region body
PF: predicated region fallthrough
CT: control target
= control target key end

     0   :  { %v1384_v0 = vmov 0   ;;  %v1385_v12 = vmov 0.0   ;;  %vm1386_vm0 = vmmov 0   ;;  %vm39_vm1 = vcmask 60416   ;;  %s1637_s2 = inlined_call_operand.vmem [shape: f32[88,1], index: 2, kind: input, shape index: {}]   ;;  %s1638_s0 = inlined_call_operand.vmem [shape: f32[8,8], index: 0, kind: input, shape index: {}]   ;;  %s1639_s1 = inlined_call_operand.vmem [shape: f32[56,8], index: 1, kind: input, shape index: {}]   ;;  %s1640_s3 = inlined_call_operand.vmem [shape: f32[24,8], index: 3, kind: output, shape index: {}]  }
   0x1   :  { %1370 = vset.pattern.permute.xlu0 %v1384_v0  ;;  %v21_v1 = vld [vmem:[%s1637_s2] sm:$0xf]  ;;  %1371 = vset.pattern.permute.xlu1 %v1384_v0  ;;  %v23_v2 = vld [vmem:[%s1637_s2 + $0x10] sm:$0xf]  ;;  %v24_v3 = vld [vmem:[%s1637_s2 + $0x18] sm:$0xf] }
   0x2   :  { %35 = vperm.xlu0 %1370, %v21_v1   ;;  %70 = vperm.xlu1 %1371, %v24_v3   ;;  %v22_v4 = vld [vmem:[%s1637_s2 + $0x8] sm:$0xf]  ;;  %v27_v5 = vld [vmem:[%s1637_s2 + $0x30] sm:$0xff]  ;;  %v25_v6 = vld [vmem:[%s1637_s2 + $0x20] sm:$0xf]  ;;  %vm83_vm2 = vcmask 1043456  }
   0x3   :  { %v26_v7 = vld [vmem:[%s1637_s2 + $0x28] sm:$0xf]  ;;  %v29_v8 = vld [vmem:[%s1637_s2 + $0x40] sm:$0xff]  ;;  %v28_v10 = vld [vmem:[%s1637_s2 + $0x38] sm:$0xf]  ;;  %1297 = vmatprep.subr.mxu0 %v1385_v12  ;;  %1302 = vmatprep.subr.mxu1 %v1385_v12  ;;  %vm79_vm3 = vcmask 31744  }
   0x4   :  { %v30_v9 = vld [vmem:[%s1637_s2 + $0x48] sm:$0xf]  ;;  %v31_v11 = vld [vmem:[%s1637_s2 + $0x50] sm:$0xf]  ;;  %1299 = vmatprep.mubr.msk.f32.mxu0 %vm1386_vm0, %v1385_v12  ;;  %1304 = vmatprep.mubr.msk.f32.mxu1 %vm1386_vm0, %v1385_v12  ;;  %v1449_v13 = vld [vmem:[%s1638_s0] sm:$0xf] }
   0x5   :  { %v1454_v14 = vld [vmem:[%s1638_s0 + $0x4] sm:$0xf]  ;;  %v1465_v1 = vld [vmem:[%s1639_s1 + $0x8] sm:$0xff]  ;;  %v1480_v3 = vld [vmem:[%s1639_s1] sm:$0xf]  ;;  %vm158_vm4 = vcmask 64512  }
   0x6   :  { %64 = vperm.xlu0 %1370, %v23_v2   ;;  %241 = vperm.xlu1 %1371, %v22_v4  }
   0xa   :  { %76 = vperm.xlu0 %1370, %v27_v5   ;;  %343 = vperm.xlu1 %1371, %v25_v6  }
   0xe   :  { %349 = vperm.xlu0 %1370, %v26_v7   ;;  %355 = vperm.xlu1 %1371, %v29_v8  }
  0x12   :  { %511 = vperm.xlu0 %1370, %v30_v9   ;;  %235 = vperm.xlu1 %1371, %v28_v10   ;;  %v1493_v9 = vld [vmem:[%s1639_s1 + $0x10] sm:$0xf] }
  0x16   :  { %669 = vperm.xlu0 %1370, %v31_v11  }
  0x81   :  { %v36_v15 = vpop.permute.xlu0 %35  ;;  %v71_v63 = vpop.permute.xlu1 %70 }
  0x82   :  { %v38_v16 = vadd.f32 %v36_v15, %v1449_v13  ;;  %v675_v17 = vadd.f32 %v1454_v14, %v36_v15 }
  0x84   :  { %v40_v18 = vsel %vm39_vm1, %v38_v16, 0.0  ;;  %v676_v19 = vsel %vm39_vm1, %v675_v17, 0.0 }
  0x85   :  { %v41_v20 = vrot.slane %v40_v18, 4  ;;  %v677_v21 = vrot.slane %v676_v19, 4  ;;  %v65_v59 = vpop.permute.xlu0 %64  ;;  %v1495_v10 = vpop.permute.xlu1 %241 }
  0x87   :  { %v42_v22 = vadd.f32 %v41_v20, %v40_v18  ;;  %v678_v23 = vadd.f32 %v677_v21, %v676_v19 }
  0x89   :  { %v43_v24 = vrot.slane %v42_v22, 2  ;;  %v679_v25 = vrot.slane %v678_v23, 2  ;;  %v1487_v4 = vpop.permute.xlu0 %76 }
  0x8b   :  { %v44_v26 = vadd.f32 %v43_v24, %v42_v22  ;;  %v680_v27 = vadd.f32 %v679_v25, %v678_v23 }
  0x8d   :  { %v45_v28 = vrot.slane %v44_v26, 1  ;;  %v681_v29 = vrot.slane %v680_v27, 1 }
  0x8f   :  { %v46_v30 = vadd.f32 %v45_v28, %v44_v26  ;;  %v682_v31 = vadd.f32 %v681_v29, %v680_v27 }
  0x91   :  { %v48_v32 = vmul.f32 0.25, %v46_v30  ;;  %v683_v33 = vmul.f32 0.25, %v682_v31 }
  0x93   :  { %v49_v34 = vsub.f32 %v38_v16, %v48_v32  ;;  %v684_v35 = vsub.f32 %v675_v17, %v683_v33 }
  0x95   :  { %v50_v36 = vmul.f32 %v49_v34, %v49_v34  ;;  %v685_v37 = vmul.f32 %v684_v35, %v684_v35 }
  0x97   :  { %v51_v38 = vsel %vm39_vm1, %v50_v36, 0.0  ;;  %v686_v39 = vsel %vm39_vm1, %v685_v37, 0.0  ;;  %v1505_v37 = vpop.permute.xlu1 %343 }
  0x98   :  { %v52_v40 = vrot.slane %v51_v38, 4  ;;  %v687_v41 = vrot.slane %v686_v39, 4 }
  0x9a   :  { %v53_v42 = vadd.f32 %v52_v40, %v51_v38  ;;  %v688_v43 = vadd.f32 %v687_v41, %v686_v39  ;;  %v1508_v39 = vpop.permute.xlu0 %349  ;;  %v1514_v41 = vld [vmem:[%s1639_s1 + $0x18] sm:$0xff] }
  0x9c   :  { %v54_v44 = vrot.slane %v53_v42, 2  ;;  %v689_v45 = vrot.slane %v688_v43, 2 }
  0x9e   :  { %v55_v46 = vadd.f32 %v54_v44, %v53_v42  ;;  %v690_v47 = vadd.f32 %v689_v45, %v688_v43  ;;  %v1522_v42 = vpop.permute.xlu1 %355 }
  0xa0   :  { %v56_v48 = vrot.slane %v55_v46, 1  ;;  %v691_v49 = vrot.slane %v690_v47, 1 }
  0xa2   :  { %v57_v50 = vadd.f32 %v56_v48, %v55_v46  ;;  %v692_v51 = vadd.f32 %v691_v49, %v690_v47  ;;  %v1524_v46 = vpop.permute.xlu1 %235 }
  0xa4   :  { %v58_v52 = vmul.f32 0.25, %v57_v50  ;;  %v693_v53 = vmul.f32 0.25, %v692_v51 }
  0xa6   :  { %v59_v54 = vadd.f32 1e-05, %v58_v52  ;;  %v694_v55 = vadd.f32 1e-05, %v693_v53  ;;  %v1535_v52 = vld [vmem:[%s1639_s1 + $0x20] sm:$0xf] }
  0xa7   :  { %v1547_v53 = vld [vmem:[%s1639_s1 + $0x28] sm:$0xf] }
  0xa8   :  { %1372 = vrsqrt.f32 %v59_v54 }
  0xa9   :  { %1374 = vrsqrt.f32 %v694_v55 }
  0xb2   :  { %v1373_v56 = vpop.eup %1372 }
  0xb3   :  { %v1375_v57 = vpop.eup %1374  ;;  %v61_v58 = vmul.f32 %v1373_v56, %v49_v34 }
  0xb4   :  { %v696_v60 = vmul.f32 %v1375_v57, %v684_v35  ;;  %v1553_v57 = vpop.permute.xlu0 %511 }
  0xb5   :  { %v67_v61 = vmul.f32 %v65_v59, %v61_v58 }
  0xb6   :  { %v697_v62 = vmul.f32 %v696_v60, %v65_v59  ;;  %v1559_v59 = vld [vmem:[%s1639_s1 + $0x30] sm:$0xf] }
  0xb7   :  { %v73_v0 = vadd.f32 %v71_v63, %v67_v61 }
  0xb8   :  { %v1467_v2 = vadd.f32 %v697_v62, %v71_v63 }
  0xb9   :  { %1298 = vmatpush3.msk.msra.mxu0 %vm83_vm2, %v73_v0 }
  0xba   :  { %1300 = vmatmul.mubr.msk.f32.vlgmr.msra.gmra.mrb[0].mxu0 %vm79_vm3, %v1465_v1  ;;  %1307 = vmatprep.subr.mxu0 %v1385_v12 }
  0xbb   :  { %1308 = vmatpush3.msk.msra.mxu0 %vm83_vm2, %v1449_v13  ;;  %1309 = vmatprep.mubr.msk.f32.mxu0 %vm1386_vm0, %v1385_v12 }
  0xbc   :  { %1317 = vmatprep.subr.mxu0 %v1385_v12 }
  0xbe   :  { %1310 = vmatmul.mubr.msk.f32.vlgmr.msra.gmra.mrb[2].mxu0 %vm79_vm3, %v1480_v3 }
  0xbf   :  { %1319 = vmatprep.mubr.msk.f32.mxu0 %vm1386_vm0, %v1385_v12 }
 0x18d   :  { %v153_v5 = vpop.f32.mrb[0].mxu0 }
 0x18e   :  { %v154_v6 = vadd.f32 %v153_v5, %v1487_v4  ;;  %v1301_v7 = vpop.f32.mrb[1].mxu0 }
 0x190   :  { %v157_v8 = vmax.f32 %v154_v6, 0.0 }
 0x191   :  { %v316_v11 = vpop.f32.mrb[2].mxu0 }
 0x192   :  { %v317_v13 = vadd.f32 %v316_v11, %v1495_v10  ;;  %1303 = vmatpush3.msra.mxu1 %v157_v8  ;;  %v1311_v15 = vpop.f32.mrb[3].mxu0 }
 0x193   :  { %1305 = vmatmul.mubr.msk.f32.vlgmr.msra.gmra.mrb[0].mxu1 %vm158_vm4, %v1493_v9  ;;  %1312 = vmatprep.subr.mxu1 %v1385_v12 }
 0x194   :  { %v320_v16 = vsel %vm39_vm1, %v317_v13, 0.0  ;;  %1314 = vmatprep.mubr.msk.f32.mxu1 %vm1386_vm0, %v1385_v12 }
 0x195   :  { %v321_v17 = vrot.slane %v320_v16, 4 }
 0x197   :  { %v322_v18 = vadd.f32 %v321_v17, %v320_v16 }
 0x199   :  { %v323_v19 = vrot.slane %v322_v18, 2 }
 0x19b   :  { %v324_v20 = vadd.f32 %v323_v19, %v322_v18 }
 0x19d   :  { %v325_v21 = vrot.slane %v324_v20, 1 }
 0x19f   :  { %v326_v22 = vadd.f32 %v325_v21, %v324_v20 }
 0x1a1   :  { %v327_v23 = vmul.f32 0.25, %v326_v22 }
 0x1a3   :  { %v328_v24 = vsub.f32 %v317_v13, %v327_v23 }
 0x1a5   :  { %v329_v25 = vmul.f32 %v328_v24, %v328_v24 }
 0x1a7   :  { %v330_v26 = vsel %vm39_vm1, %v329_v25, 0.0 }
 0x1a8   :  { %v331_v27 = vrot.slane %v330_v26, 4 }
 0x1aa   :  { %v332_v28 = vadd.f32 %v331_v27, %v330_v26 }
 0x1ac   :  { %v333_v29 = vrot.slane %v332_v28, 2 }
 0x1ae   :  { %v334_v30 = vadd.f32 %v333_v29, %v332_v28 }
 0x1b0   :  { %v335_v31 = vrot.slane %v334_v30, 1 }
 0x1b2   :  { %v336_v32 = vadd.f32 %v335_v31, %v334_v30 }
 0x1b4   :  { %v337_v33 = vmul.f32 0.25, %v336_v32 }
 0x1b6   :  { %v338_v34 = vadd.f32 1e-05, %v337_v33 }
 0x1b8   :  { %1376 = vrsqrt.f32 %v338_v34 }
 0x1c2   :  { %v1377_v35 = vpop.eup %1376 }
 0x1c3   :  { %v340_v36 = vmul.f32 %v1377_v35, %v328_v24 }
 0x1c5   :  { %v346_v38 = vmul.f32 %v1505_v37, %v340_v36 }
 0x1c7   :  { %v352_v40 = vadd.f32 %v1508_v39, %v346_v38 }
 0x1c9   :  { %1313 = vmatpush3.msk.msra.mxu1 %vm83_vm2, %v352_v40 }
 0x1ca   :  { %1315 = vmatmul.mubr.msk.f32.vlgmr.msra.gmra.mrb[2].mxu1 %vm79_vm3, %v1514_v41  ;;  %1322 = vmatprep.subr.mxu1 %v1385_v12 }
 0x1cb   :  { %1324 = vmatprep.mubr.msk.f32.mxu1 %vm1386_vm0, %v1385_v12 }
 0x266   :  { %v228_v43 = vpop.f32.mrb[0].mxu1 }
 0x267   :  { %v232_v44 = vadd.f32 %v228_v43, %v73_v0  ;;  %v1306_v45 = vpop.f32.mrb[1].mxu1 }
 0x269   :  { %v238_v47 = vadd.f32 %v1524_v46, %v232_v44 }
 0x26b   :  { %1237 = vst.msk [vmem:[%s1640_s3 + $0x8] sm:$0xf] %vm39_vm1, %v238_v47 }
 0x29d   :  { %v430_v48 = vpop.f32.mrb[2].mxu1 }
 0x29e   :  { %v431_v49 = vadd.f32 %v430_v48, %v1522_v42  ;;  %v1316_v50 = vpop.f32.mrb[3].mxu1 }
 0x2a0   :  { %v434_v51 = vmax.f32 %v431_v49, 0.0 }
 0x2a2   :  { %1318 = vmatpush3.msra.mxu0 %v434_v51 }
 0x2a3   :  { %1320 = vmatmul.mubr.msk.f32.vlgmr.msra.gmra.mrb[4].mxu0 %vm158_vm4, %v1535_v52  ;;  %1327 = vmatprep.subr.mxu0 %v1385_v12 }
 0x2a4   :  { %1328 = vmatpush3.msk.msra.mxu0 %vm83_vm2, %v238_v47  ;;  %1329 = vmatprep.mubr.msk.f32.mxu0 %vm1386_vm0, %v1385_v12 }
 0x2a5   :  { %1337 = vmatprep.subr.mxu0 %v1385_v12 }
 0x2a7   :  { %1330 = vmatmul.mubr.msk.f32.vlgmr.msra.gmra.mrb[6].mxu0 %vm79_vm3, %v1547_v53 }
 0x2a8   :  { %1339 = vmatprep.mubr.msk.f32.mxu0 %vm1386_vm0, %v1385_v12 }
 0x376   :  { %v504_v54 = vpop.f32.mrb[4].mxu0 }
 0x377   :  { %v508_v55 = vadd.f32 %v504_v54, %v352_v40  ;;  %v1321_v56 = vpop.f32.mrb[5].mxu0 }
 0x379   :  { %v514_v58 = vadd.f32 %v1553_v57, %v508_v55 }
 0x37a   :  { %v663_v60 = vpop.f32.mrb[6].mxu0 }
 0x37b   :  { %1239 = vst.msk [vmem:[%s1640_s3 + $0x10] sm:$0xf] %vm39_vm1, %v514_v58  ;;  %1323 = vmatpush3.msk.msra.mxu1 %vm83_vm2, %v514_v58  ;;  %v1331_v61 = vpop.f32.mrb[7].mxu0 }
 0x37c   :  { %1325 = vmatmul.mubr.msk.f32.vlgmr.msra.gmra.mrb[4].mxu1 %vm79_vm3, %v1559_v59  ;;  %1332 = vmatprep.subr.mxu1 %v1385_v12 }
 0x37d   :  { %1333 = vmatpush3.msk.msra.mxu1 %vm83_vm2, %v1467_v2  ;;  %1334 = vmatprep.mubr.msk.f32.mxu1 %vm1386_vm0, %v1385_v12 }
 0x37e   :  { %1342 = vmatprep.subr.mxu1 %v1385_v12 }
 0x380   :  { %1335 = vmatmul.mubr.msk.f32.vlgmr.msra.gmra.mrb[6].mxu1 %vm79_vm3, %v1465_v1  ;;  %v1585_v1 = vpop.permute.xlu0 %669 }
 0x381   :  { %1343 = vmatpush3.msk.msra.mxu1 %vm83_vm2, %v1454_v14  ;;  %1344 = vmatprep.mubr.msk.f32.mxu1 %vm1386_vm0, %v1385_v12 }
 0x382   :  { %1352 = vmatprep.subr.mxu1 %v1385_v12 }
 0x384   :  { %1345 = vmatmul.mubr.msk.f32.vlgmr.msra.gmra.mrb[8].mxu1 %vm79_vm3, %v1480_v3 }
 0x385   :  { %1354 = vmatprep.mubr.msk.f32.mxu1 %vm1386_vm0, %v1385_v12 }
 0x44f   :  { %v587_v62 = vpop.f32.mrb[4].mxu1 }
 0x450   :  { %v664_v63 = vadd.f32 %v663_v60, %v587_v62  ;;  %v1326_v0 = vpop.f32.mrb[5].mxu1 }
 0x452   :  { %v672_v14 = vadd.f32 %v1585_v1, %v664_v63 }
 0x453   :  { %v768_v5 = vpop.f32.mrb[6].mxu1 }
 0x454   :  { %1378 = vtanh.f32 %v672_v14  ;;  %v769_v6 = vadd.f32 %v768_v5, %v1487_v4  ;;  %v1336_v7 = vpop.f32.mrb[7].mxu1 }
 0x456   :  { %v772_v8 = vmax.f32 %v769_v6, 0.0 }
 0x457   :  { %v914_v11 = vpop.f32.mrb[8].mxu1 }
 0x458   :  { %v915_v3 = vadd.f32 %v914_v11, %v1495_v10  ;;  %1338 = vmatpush3.msra.mxu0 %v772_v8  ;;  %v1346_v13 = vpop.f32.mrb[9].mxu1 }
 0x459   :  { %1340 = vmatmul.mubr.msk.f32.vlgmr.msra.gmra.mrb[8].mxu0 %vm158_vm4, %v1493_v9  ;;  %1347 = vmatprep.subr.mxu0 %v1385_v12 }
 0x45a   :  { %v918_v15 = vsel %vm39_vm1, %v915_v3, 0.0  ;;  %1349 = vmatprep.mubr.msk.f32.mxu0 %vm1386_vm0, %v1385_v12 }
 0x45b   :  { %v919_v16 = vrot.slane %v918_v15, 4 }
 0x45d   :  { %v920_v17 = vadd.f32 %v919_v16, %v918_v15 }
 0x45e   :  { %v1379_v4 = vpop.eup %1378 }
 0x45f   :  { %1235 = vst.msk [vmem:[%s1640_s3] sm:$0xf] %vm39_vm1, %v1379_v4  ;;  %v921_v10 = vrot.slane %v920_v17, 2 }
 0x461   :  { %v922_v18 = vadd.f32 %v921_v10, %v920_v17 }
 0x463   :  { %v923_v19 = vrot.slane %v922_v18, 1 }
 0x465   :  { %v924_v20 = vadd.f32 %v923_v19, %v922_v18 }
 0x467   :  { %v925_v9 = vmul.f32 0.25, %v924_v20 }
 0x469   :  { %v926_v21 = vsub.f32 %v915_v3, %v925_v9 }
 0x46b   :  { %v927_v22 = vmul.f32 %v926_v21, %v926_v21 }
 0x46d   :  { %v928_v23 = vsel %vm39_vm1, %v927_v22, 0.0 }
 0x46e   :  { %v929_v24 = vrot.slane %v928_v23, 4 }
 0x470   :  { %v930_v25 = vadd.f32 %v929_v24, %v928_v23 }
 0x472   :  { %v931_v26 = vrot.slane %v930_v25, 2 }
 0x474   :  { %v932_v27 = vadd.f32 %v931_v26, %v930_v25 }
 0x476   :  { %v933_v28 = vrot.slane %v932_v27, 1 }
 0x478   :  { %v934_v29 = vadd.f32 %v933_v28, %v932_v27 }
 0x47a   :  { %v935_v30 = vmul.f32 0.25, %v934_v29 }
 0x47c   :  { %v936_v31 = vadd.f32 1e-05, %v935_v30 }
 0x47e   :  { %1380 = vrsqrt.f32 %v936_v31 }
 0x488   :  { %v1381_v32 = vpop.eup %1380 }
 0x489   :  { %v938_v33 = vmul.f32 %v1381_v32, %v926_v21 }
 0x48b   :  { %v939_v34 = vmul.f32 %v938_v33, %v1505_v37 }
 0x48d   :  { %v940_v35 = vadd.f32 %v939_v34, %v1508_v39 }
 0x48f   :  { %1348 = vmatpush3.msk.msra.mxu0 %vm83_vm2, %v940_v35 }
 0x490   :  { %1350 = vmatmul.mubr.msk.f32.vlgmr.msra.gmra.mrb[10].mxu0 %vm79_vm3, %v1514_v41  ;;  %1357 = vmatprep.subr.mxu0 %v1385_v12 }
 0x491   :  { %1359 = vmatprep.mubr.msk.f32.mxu0 %vm1386_vm0, %v1385_v12 }
 0x52c   :  { %v839_v36 = vpop.f32.mrb[8].mxu0 }
 0x52d   :  { %v843_v38 = vadd.f32 %v839_v36, %v1467_v2  ;;  %v1341_v40 = vpop.f32.mrb[9].mxu0 }
 0x52f   :  { %v844_v43 = vadd.f32 %v843_v38, %v1524_v46 }
 0x531   :  { %1238 = vst.msk [vmem:[%s1640_s3 + $0xc] sm:$0xf] %vm39_vm1, %v844_v43 }
 0x563   :  { %v1010_v37 = vpop.f32.mrb[10].mxu0 }
 0x564   :  { %v1011_v39 = vadd.f32 %v1010_v37, %v1522_v42  ;;  %v1351_v41 = vpop.f32.mrb[11].mxu0 }
 0x566   :  { %v1014_v44 = vmax.f32 %v1011_v39, 0.0 }
 0x568   :  { %1353 = vmatpush3.msra.mxu1 %v1014_v44 }
 0x569   :  { %1355 = vmatmul.mubr.msk.f32.vlgmr.msra.gmra.mrb[10].mxu1 %vm158_vm4, %v1535_v52  ;;  %1362 = vmatprep.subr.mxu1 %v1385_v12 }
 0x56a   :  { %1363 = vmatpush3.msk.msra.mxu1 %vm83_vm2, %v844_v43  ;;  %1364 = vmatprep.mubr.msk.f32.mxu1 %vm1386_vm0, %v1385_v12 }
 0x56d   :  { %1365 = vmatmul.mubr.msk.f32.vlgmr.msra.gmra.mrb[12].mxu1 %vm79_vm3, %v1547_v53 }
 0x63c   :  { %v1081_v2 = vpop.f32.mrb[10].mxu1 }
 0x63d   :  { %v1085_v45 = vadd.f32 %v1081_v2, %v940_v35  ;;  %v1356_v46 = vpop.f32.mrb[11].mxu1 }
 0x63f   :  { %v1086_v42 = vadd.f32 %v1085_v45, %v1553_v57 }
 0x640   :  { %v1229_v47 = vpop.f32.mrb[12].mxu1 }
 0x641   :  { %1240 = vst.msk [vmem:[%s1640_s3 + $0x14] sm:$0xf] %vm39_vm1, %v1086_v42  ;;  %1358 = vmatpush3.msk.msra.mxu0 %vm83_vm2, %v1086_v42  ;;  %v1366_v12 = vpop.f32.mrb[13].mxu1 }
 0x642   :  { %1360 = vmatmul.mubr.msk.f32.vlgmr.msra.gmra.mrb[12].mxu0 %vm79_vm3, %v1559_v59 }
 0x715   :  { %v1156_v48 = vpop.f32.mrb[12].mxu0 }
 0x716   :  { %v1230_v49 = vadd.f32 %v1229_v47, %v1156_v48  ;;  %v1361_v50 = vpop.f32.mrb[13].mxu0 }
 0x718   :  { %v1233_v51 = vadd.f32 %v1230_v49, %v1585_v1 }
 0x71a   :  { %1382 = vtanh.f32 %v1233_v51 }
 0x724   :  { %v1383_v52 = vpop.eup %1382 }
 0x725   :  { %1236 = vst.msk [vmem:[%s1640_s3 + $0x4] sm:$0xf] %vm39_vm1, %v1383_v52 }

</bundles_post_ra>
